<compile_context>
chip_gen: v6e
topology: v6e:2x2x1
jax: 0.10.0
libtpu: 0.0.40
codegen_flags: <defaults>
</compile_context>

<pallas_src>
import math

import jax
import jax.numpy as jnp
import numpy as np
from jax.experimental import pallas as pl
from jax.experimental.pallas import tpu as pltpu


def _make_actor_kernel(seq: int, batch: int, hidden: int, action_s: int,
                       max_angle: float):
    S, B, H, A = seq, batch, hidden, action_s

    def kernel(x_ref, h0_ref, c0_ref, wih_ref, whh_ref, b_ref, w2_ref, b2_ref,
               out_ref, h_out_ref, c_out_ref, h_all_sc):
        # ---- batch-parallel input projection for ALL timesteps (off the
        # serial dependency chain): (S*B, I) @ (I, 4H) + fused bias. ----
        gates_x = (jnp.dot(x_ref[...], wih_ref[...],
                           preferred_element_type=jnp.float32)
                   + b_ref[...])                                   # (S*B, 4H)

        whh = whh_ref[...]                                         # (H, 4H)
        h = h0_ref[...]                                            # (B, H)
        c = c0_ref[...]                                            # (B, H)

        # ---- serial LSTM recurrence, fully unrolled (S is static); h/c stay
        # in vregs, only h @ W_hh^T is on the per-step critical path. ----
        for t in range(S):
            g = gates_x[t * B:(t + 1) * B, :] + jnp.dot(
                h, whh, preferred_element_type=jnp.float32)        # (B, 4H)
            # One EUP sigmoid pass over the full gate vector (i|f|g|o lanes),
            # one tanh pass over the cell-gate lanes only.
            s = jax.nn.sigmoid(g)                                  # (B, 4H)
            i_g = s[:, 0 * H:1 * H]
            f_g = s[:, 1 * H:2 * H]
            o_g = s[:, 3 * H:4 * H]
            g_g = jnp.tanh(g[:, 2 * H:3 * H])
            c = f_g * c + i_g * g_g
            h = o_g * jnp.tanh(c)
            h_all_sc[t * B:(t + 1) * B, :] = h     # static sublane offset

        # final (h, c) state written once, after the loop
        h_out_ref[...] = h
        c_out_ref[...] = c

        # ---- output Linear + tanh head, hoisted off the recurrence:
        # one dense matmul over all timesteps and ONE store.  mu and log_std
        # are merged into a single (S*B, 2A) slab via a static lane mask. ----
        y = (jnp.dot(h_all_sc[...], w2_ref[...],
                     preferred_element_type=jnp.float32)
             + b2_ref[...])                                        # (S*B, 2A)
        lane = jax.lax.broadcasted_iota(jnp.int32, y.shape, 1)
        out_ref[...] = jnp.where(lane < A, jnp.tanh(y) * max_angle, y)

    return kernel


def actor_forward(x, h0, c0, params, *, max_angle=math.pi):
    """x: (seq, batch, input_s) f32; h0/c0: (batch, hidden) f32."""
    seq, B, I = x.shape
    H = h0.shape[-1]
    A = params["w2"].shape[1] // 2

    # glue: pre-transpose / fuse biases so the kernel does (rows,in)@(in,out)
    x2d = jnp.asarray(x, jnp.float32).reshape(seq * B, I)           # (S*B, I)
    wih_t = jnp.asarray(params["w_ih"].T, jnp.float32)              # (I, 4H)
    whh_t = jnp.asarray(params["w_hh"].T, jnp.float32)              # (H, 4H)
    b = jnp.asarray(params["b_ih"] + params["b_hh"],
                    jnp.float32).reshape(1, 4 * H)                  # (1, 4H)
    w2 = jnp.asarray(params["w2"], jnp.float32)                     # (H, 2A)
    b2 = jnp.asarray(params["b2"], jnp.float32).reshape(1, 2 * A)   # (1, 2A)

    kernel = _make_actor_kernel(seq, B, H, A, max_angle)

    def vmem_spec():
        return pl.BlockSpec(memory_space=pltpu.MemorySpace.VMEM)

    out, h, c = pl.pallas_call(
        kernel,
        out_shape=(
            jax.ShapeDtypeStruct((seq * B, 2 * A), jnp.float32),  # mu|log_std
            jax.ShapeDtypeStruct((B, H), jnp.float32),            # final h
            jax.ShapeDtypeStruct((B, H), jnp.float32),            # final c
        ),
        in_specs=[vmem_spec() for _ in range(8)],
        out_specs=(vmem_spec(), vmem_spec(), vmem_spec()),
        scratch_shapes=[pltpu.VMEM((seq * B, H), jnp.float32)],   # all h_t
    )(x2d, jnp.asarray(h0, jnp.float32), jnp.asarray(c0, jnp.float32),
      wih_t, whh_t, b, w2, b2)

    # glue: split the merged head and mimic PyTorch .squeeze() (removes ALL
    # size-1 dims; here batch=1).
    y = out.reshape(seq, B, 2 * A)
    mu = jnp.squeeze(y[..., :A])
    log_std = jnp.squeeze(y[..., A:])
    return mu, log_std, h, c


def reference_forward(x, h0, c0, params, max_angle):
    """Pure-JAX reference with exact PyTorch LSTM / Linear semantics."""
    H = h0.shape[-1]
    A = params["w2"].shape[1] // 2

    def step(carry, x_t):
        h, c = carry
        gates = (x_t @ params["w_ih"].T + params["b_ih"]
                 + h @ params["w_hh"].T + params["b_hh"])
        i = jax.nn.sigmoid(gates[:, 0 * H:1 * H])
        f = jax.nn.sigmoid(gates[:, 1 * H:2 * H])
        g = jnp.tanh(gates[:, 2 * H:3 * H])
        o = jax.nn.sigmoid(gates[:, 3 * H:4 * H])
        c = f * c + i * g
        h = o * jnp.tanh(c)
        return (h, c), h

    (h, c), outs = jax.lax.scan(step, (h0, c0), x)
    y = outs @ params["w2"] + params["b2"]
    mu = jnp.tanh(y[..., :A]) * max_angle
    return jnp.squeeze(mu), jnp.squeeze(y[..., A:]), h, c


if __name__ == "__main__":
    # Small shapes consistent with the module's forward:
    # input_s=6, hidden_size=32 (4H = 128 -> one lane-full gate vreg),
    # action_s=2, batch=1, seq=8, learn_std=True.
    input_s, hidden_size, action_s, batch, seq = 6, 32, 2, 1, 8
    max_angle = math.pi

    key = jax.random.PRNGKey(0)
    k_x, k_wih, k_whh, k_bih, k_bhh, k_w2, k_b2 = jax.random.split(key, 7)

    # Deterministic parameter init (PyTorch-style: LSTM uniform(-1/sqrt(H),..),
    # Linear ~ N(0, 0.1) per small_weight_init).
    bound = 1.0 / math.sqrt(hidden_size)
    params = {
        "w_ih": jax.random.uniform(k_wih, (4 * hidden_size, input_s),
                                   jnp.float32, -bound, bound),
        "w_hh": jax.random.uniform(k_whh, (4 * hidden_size, hidden_size),
                                   jnp.float32, -bound, bound),
        "b_ih": jax.random.uniform(k_bih, (4 * hidden_size,),
                                   jnp.float32, -bound, bound),
        "b_hh": jax.random.uniform(k_bhh, (4 * hidden_size,),
                                   jnp.float32, -bound, bound),
        # stored as (in, out) = Linear.weight.T
        "w2": 0.1 * jax.random.normal(k_w2, (hidden_size, 2 * action_s),
                                      jnp.float32),
        "b2": 0.1 * jax.random.normal(k_b2, (2 * action_s,), jnp.float32),
    }

    x = jax.random.normal(k_x, (seq, batch, input_s), jnp.float32)
    h0 = jnp.zeros((batch, hidden_size), jnp.float32)  # init_states()
    c0 = jnp.zeros((batch, hidden_size), jnp.float32)

    mu, log_std, h, c = actor_forward(x, h0, c0, params, max_angle=max_angle)
    jax.block_until_ready((mu, log_std, h, c))

    mu_r, log_std_r, h_r, c_r = reference_forward(x, h0, c0, params, max_angle)
    np.testing.assert_allclose(np.asarray(mu), np.asarray(mu_r),
                               rtol=1e-5, atol=1e-5)
    np.testing.assert_allclose(np.asarray(log_std), np.asarray(log_std_r),
                               rtol=1e-5, atol=1e-5)
    np.testing.assert_allclose(np.asarray(h), np.asarray(h_r),
                               rtol=1e-5, atol=1e-5)
    np.testing.assert_allclose(np.asarray(c), np.asarray(c_r),
                               rtol=1e-5, atol=1e-5)

    print("KERNEL_OK")
</pallas_src>

<mosaic_0001>
module attributes {stable_mosaic.version = 11 : i64} {
  func.func @kernel(%arg0: memref<8x6xf32, #tpu.memory_space<vmem>>, %arg1: memref<1x32xf32, #tpu.memory_space<vmem>>, %arg2: memref<1x32xf32, #tpu.memory_space<vmem>>, %arg3: memref<6x128xf32, #tpu.memory_space<vmem>>, %arg4: memref<32x128xf32, #tpu.memory_space<vmem>>, %arg5: memref<1x128xf32, #tpu.memory_space<vmem>>, %arg6: memref<32x4xf32, #tpu.memory_space<vmem>>, %arg7: memref<1x4xf32, #tpu.memory_space<vmem>>, %arg8: memref<8x4xf32, #tpu.memory_space<vmem>>, %arg9: memref<1x32xf32, #tpu.memory_space<vmem>>, %arg10: memref<1x32xf32, #tpu.memory_space<vmem>>, %arg11: memref<8x32xf32, #tpu.memory_space<vmem>>) attributes {dimension_semantics = [], scalar_prefetch = 0 : i64, scratch_operands = 1 : i64, tpu.core_type = #tpu.core_type<tc>} {
    %c0 = arith.constant 0 : index
    %c0_0 = arith.constant 0 : index
    %0 = vector.load %arg0[%c0, %c0_0] : memref<8x6xf32, #tpu.memory_space<vmem>>, vector<8x6xf32>
    %c0_1 = arith.constant 0 : index
    %c0_2 = arith.constant 0 : index
    %1 = vector.load %arg3[%c0_1, %c0_2] : memref<6x128xf32, #tpu.memory_space<vmem>>, vector<6x128xf32>
    %cst = arith.constant dense<0.000000e+00> : vector<8x128xf32>
    %2 = tpu.matmul %0, %1, %cst {dimension_numbers = #tpu.dot_dimension_numbers<[1], [0], [0], [1], [0, 0, 1, 1], [], []>} : vector<8x6xf32>, vector<6x128xf32>, vector<8x128xf32> -> vector<8x128xf32>
    %c0_3 = arith.constant 0 : index
    %c0_4 = arith.constant 0 : index
    %3 = vector.load %arg5[%c0_3, %c0_4] : memref<1x128xf32, #tpu.memory_space<vmem>>, vector<1x128xf32>
    %4 = vector.broadcast %3 : vector<1x128xf32> to vector<8x128xf32>
    %5 = arith.addf %2, %4 : vector<8x128xf32>
    %c0_5 = arith.constant 0 : index
    %c0_6 = arith.constant 0 : index
    %6 = vector.load %arg4[%c0_5, %c0_6] : memref<32x128xf32, #tpu.memory_space<vmem>>, vector<32x128xf32>
    %c0_7 = arith.constant 0 : index
    %c0_8 = arith.constant 0 : index
    %7 = vector.load %arg1[%c0_7, %c0_8] : memref<1x32xf32, #tpu.memory_space<vmem>>, vector<1x32xf32>
    %c0_9 = arith.constant 0 : index
    %c0_10 = arith.constant 0 : index
    %8 = vector.load %arg2[%c0_9, %c0_10] : memref<1x32xf32, #tpu.memory_space<vmem>>, vector<1x32xf32>
    %9 = vector.extract_strided_slice %5 {offsets = [0, 0], sizes = [1, 128], strides = [1, 1]} : vector<8x128xf32> to vector<1x128xf32>
    %cst_11 = arith.constant dense<0.000000e+00> : vector<1x128xf32>
    %10 = tpu.matmul %7, %6, %cst_11 {dimension_numbers = #tpu.dot_dimension_numbers<[1], [0], [0], [1], [0, 0, 1, 1], [], []>} : vector<1x32xf32>, vector<32x128xf32>, vector<1x128xf32> -> vector<1x128xf32>
    %11 = arith.addf %9, %10 : vector<1x128xf32>
    %12 = arith.negf %11 : vector<1x128xf32>
    %13 = math.exp %12 : vector<1x128xf32>
    %cst_12 = arith.constant 1.000000e+00 : f32
    %14 = vector.broadcast %cst_12 : f32 to vector<1x128xf32>
    %15 = arith.addf %14, %13 : vector<1x128xf32>
    %16 = arith.divf %14, %15 : vector<1x128xf32>
    %17 = vector.extract_strided_slice %16 {offsets = [0, 0], sizes = [1, 32], strides = [1, 1]} : vector<1x128xf32> to vector<1x32xf32>
    %18 = vector.extract_strided_slice %16 {offsets = [0, 32], sizes = [1, 32], strides = [1, 1]} : vector<1x128xf32> to vector<1x32xf32>
    %19 = vector.extract_strided_slice %16 {offsets = [0, 96], sizes = [1, 32], strides = [1, 1]} : vector<1x128xf32> to vector<1x32xf32>
    %20 = vector.extract_strided_slice %11 {offsets = [0, 64], sizes = [1, 32], strides = [1, 1]} : vector<1x128xf32> to vector<1x32xf32>
    %21 = math.tanh %20 : vector<1x32xf32>
    %22 = arith.mulf %18, %8 : vector<1x32xf32>
    %23 = arith.mulf %17, %21 : vector<1x32xf32>
    %24 = arith.addf %22, %23 : vector<1x32xf32>
    %25 = math.tanh %24 : vector<1x32xf32>
    %26 = arith.mulf %19, %25 : vector<1x32xf32>
    %c0_13 = arith.constant 0 : index
    %c0_14 = arith.constant 0 : index
    %27 = vector.load %arg11[%c0_13, %c0_14] : memref<8x32xf32, #tpu.memory_space<vmem>>, vector<1x32xf32>
    tpu.vector_store %arg11[%c0_13, %c0_14], %26 {strides = array<i32>} : memref<8x32xf32, #tpu.memory_space<vmem>>, vector<1x32xf32>,
    %28 = vector.extract_strided_slice %5 {offsets = [1, 0], sizes = [1, 128], strides = [1, 1]} : vector<8x128xf32> to vector<1x128xf32>
    %cst_15 = arith.constant dense<0.000000e+00> : vector<1x128xf32>
    %29 = tpu.matmul %26, %6, %cst_15 {dimension_numbers = #tpu.dot_dimension_numbers<[1], [0], [0], [1], [0, 0, 1, 1], [], []>} : vector<1x32xf32>, vector<32x128xf32>, vector<1x128xf32> -> vector<1x128xf32>
    %30 = arith.addf %28, %29 : vector<1x128xf32>
    %31 = arith.negf %30 : vector<1x128xf32>
    %32 = math.exp %31 : vector<1x128xf32>
    %cst_16 = arith.constant 1.000000e+00 : f32
    %33 = vector.broadcast %cst_16 : f32 to vector<1x128xf32>
    %34 = arith.addf %33, %32 : vector<1x128xf32>
    %35 = arith.divf %33, %34 : vector<1x128xf32>
    %36 = vector.extract_strided_slice %35 {offsets = [0, 0], sizes = [1, 32], strides = [1, 1]} : vector<1x128xf32> to vector<1x32xf32>
    %37 = vector.extract_strided_slice %35 {offsets = [0, 32], sizes = [1, 32], strides = [1, 1]} : vector<1x128xf32> to vector<1x32xf32>
    %38 = vector.extract_strided_slice %35 {offsets = [0, 96], sizes = [1, 32], strides = [1, 1]} : vector<1x128xf32> to vector<1x32xf32>
    %39 = vector.extract_strided_slice %30 {offsets = [0, 64], sizes = [1, 32], strides = [1, 1]} : vector<1x128xf32> to vector<1x32xf32>
    %40 = math.tanh %39 : vector<1x32xf32>
    %41 = arith.mulf %37, %24 : vector<1x32xf32>
    %42 = arith.mulf %36, %40 : vector<1x32xf32>
    %43 = arith.addf %41, %42 : vector<1x32xf32>
    %44 = math.tanh %43 : vector<1x32xf32>
    %45 = arith.mulf %38, %44 : vector<1x32xf32>
    %c1 = arith.constant 1 : index
    %c0_17 = arith.constant 0 : index
    %46 = vector.load %arg11[%c1, %c0_17] : memref<8x32xf32, #tpu.memory_space<vmem>>, vector<1x32xf32>
    tpu.vector_store %arg11[%c1, %c0_17], %45 {strides = array<i32>} : memref<8x32xf32, #tpu.memory_space<vmem>>, vector<1x32xf32>,
    %47 = vector.extract_strided_slice %5 {offsets = [2, 0], sizes = [1, 128], strides = [1, 1]} : vector<8x128xf32> to vector<1x128xf32>
    %cst_18 = arith.constant dense<0.000000e+00> : vector<1x128xf32>
    %48 = tpu.matmul %45, %6, %cst_18 {dimension_numbers = #tpu.dot_dimension_numbers<[1], [0], [0], [1], [0, 0, 1, 1], [], []>} : vector<1x32xf32>, vector<32x128xf32>, vector<1x128xf32> -> vector<1x128xf32>
    %49 = arith.addf %47, %48 : vector<1x128xf32>
    %50 = arith.negf %49 : vector<1x128xf32>
    %51 = math.exp %50 : vector<1x128xf32>
    %cst_19 = arith.constant 1.000000e+00 : f32
    %52 = vector.broadcast %cst_19 : f32 to vector<1x128xf32>
    %53 = arith.addf %52, %51 : vector<1x128xf32>
    %54 = arith.divf %52, %53 : vector<1x128xf32>
    %55 = vector.extract_strided_slice %54 {offsets = [0, 0], sizes = [1, 32], strides = [1, 1]} : vector<1x128xf32> to vector<1x32xf32>
    %56 = vector.extract_strided_slice %54 {offsets = [0, 32], sizes = [1, 32], strides = [1, 1]} : vector<1x128xf32> to vector<1x32xf32>
    %57 = vector.extract_strided_slice %54 {offsets = [0, 96], sizes = [1, 32], strides = [1, 1]} : vector<1x128xf32> to vector<1x32xf32>
    %58 = vector.extract_strided_slice %49 {offsets = [0, 64], sizes = [1, 32], strides = [1, 1]} : vector<1x128xf32> to vector<1x32xf32>
    %59 = math.tanh %58 : vector<1x32xf32>
    %60 = arith.mulf %56, %43 : vector<1x32xf32>
    %61 = arith.mulf %55, %59 : vector<1x32xf32>
    %62 = arith.addf %60, %61 : vector<1x32xf32>
    %63 = math.tanh %62 : vector<1x32xf32>
    %64 = arith.mulf %57, %63 : vector<1x32xf32>
    %c2 = arith.constant 2 : index
    %c0_20 = arith.constant 0 : index
    %65 = vector.load %arg11[%c2, %c0_20] : memref<8x32xf32, #tpu.memory_space<vmem>>, vector<1x32xf32>
    tpu.vector_store %arg11[%c2, %c0_20], %64 {strides = array<i32>} : memref<8x32xf32, #tpu.memory_space<vmem>>, vector<1x32xf32>,
    %66 = vector.extract_strided_slice %5 {offsets = [3, 0], sizes = [1, 128], strides = [1, 1]} : vector<8x128xf32> to vector<1x128xf32>
    %cst_21 = arith.constant dense<0.000000e+00> : vector<1x128xf32>
    %67 = tpu.matmul %64, %6, %cst_21 {dimension_numbers = #tpu.dot_dimension_numbers<[1], [0], [0], [1], [0, 0, 1, 1], [], []>} : vector<1x32xf32>, vector<32x128xf32>, vector<1x128xf32> -> vector<1x128xf32>
    %68 = arith.addf %66, %67 : vector<1x128xf32>
    %69 = arith.negf %68 : vector<1x128xf32>
    %70 = math.exp %69 : vector<1x128xf32>
    %cst_22 = arith.constant 1.000000e+00 : f32
    %71 = vector.broadcast %cst_22 : f32 to vector<1x128xf32>
    %72 = arith.addf %71, %70 : vector<1x128xf32>
    %73 = arith.divf %71, %72 : vector<1x128xf32>
    %74 = vector.extract_strided_slice %73 {offsets = [0, 0], sizes = [1, 32], strides = [1, 1]} : vector<1x128xf32> to vector<1x32xf32>
    %75 = vector.extract_strided_slice %73 {offsets = [0, 32], sizes = [1, 32], strides = [1, 1]} : vector<1x128xf32> to vector<1x32xf32>
    %76 = vector.extract_strided_slice %73 {offsets = [0, 96], sizes = [1, 32], strides = [1, 1]} : vector<1x128xf32> to vector<1x32xf32>
    %77 = vector.extract_strided_slice %68 {offsets = [0, 64], sizes = [1, 32], strides = [1, 1]} : vector<1x128xf32> to vector<1x32xf32>
    %78 = math.tanh %77 : vector<1x32xf32>
    %79 = arith.mulf %75, %62 : vector<1x32xf32>
    %80 = arith.mulf %74, %78 : vector<1x32xf32>
    %81 = arith.addf %79, %80 : vector<1x32xf32>
    %82 = math.tanh %81 : vector<1x32xf32>
    %83 = arith.mulf %76, %82 : vector<1x32xf32>
    %c3 = arith.constant 3 : index
    %c0_23 = arith.constant 0 : index
    %84 = vector.load %arg11[%c3, %c0_23] : memref<8x32xf32, #tpu.memory_space<vmem>>, vector<1x32xf32>
    tpu.vector_store %arg11[%c3, %c0_23], %83 {strides = array<i32>} : memref<8x32xf32, #tpu.memory_space<vmem>>, vector<1x32xf32>,
    %85 = vector.extract_strided_slice %5 {offsets = [4, 0], sizes = [1, 128], strides = [1, 1]} : vector<8x128xf32> to vector<1x128xf32>
    %cst_24 = arith.constant dense<0.000000e+00> : vector<1x128xf32>
    %86 = tpu.matmul %83, %6, %cst_24 {dimension_numbers = #tpu.dot_dimension_numbers<[1], [0], [0], [1], [0, 0, 1, 1], [], []>} : vector<1x32xf32>, vector<32x128xf32>, vector<1x128xf32> -> vector<1x128xf32>
    %87 = arith.addf %85, %86 : vector<1x128xf32>
    %88 = arith.negf %87 : vector<1x128xf32>
    %89 = math.exp %88 : vector<1x128xf32>
    %cst_25 = arith.constant 1.000000e+00 : f32
    %90 = vector.broadcast %cst_25 : f32 to vector<1x128xf32>
    %91 = arith.addf %90, %89 : vector<1x128xf32>
    %92 = arith.divf %90, %91 : vector<1x128xf32>
    %93 = vector.extract_strided_slice %92 {offsets = [0, 0], sizes = [1, 32], strides = [1, 1]} : vector<1x128xf32> to vector<1x32xf32>
    %94 = vector.extract_strided_slice %92 {offsets = [0, 32], sizes = [1, 32], strides = [1, 1]} : vector<1x128xf32> to vector<1x32xf32>
    %95 = vector.extract_strided_slice %92 {offsets = [0, 96], sizes = [1, 32], strides = [1, 1]} : vector<1x128xf32> to vector<1x32xf32>
    %96 = vector.extract_strided_slice %87 {offsets = [0, 64], sizes = [1, 32], strides = [1, 1]} : vector<1x128xf32> to vector<1x32xf32>
    %97 = math.tanh %96 : vector<1x32xf32>
    %98 = arith.mulf %94, %81 : vector<1x32xf32>
    %99 = arith.mulf %93, %97 : vector<1x32xf32>
    %100 = arith.addf %98, %99 : vector<1x32xf32>
    %101 = math.tanh %100 : vector<1x32xf32>
    %102 = arith.mulf %95, %101 : vector<1x32xf32>
    %c4 = arith.constant 4 : index
    %c0_26 = arith.constant 0 : index
    %103 = vector.load %arg11[%c4, %c0_26] : memref<8x32xf32, #tpu.memory_space<vmem>>, vector<1x32xf32>
    tpu.vector_store %arg11[%c4, %c0_26], %102 {strides = array<i32>} : memref<8x32xf32, #tpu.memory_space<vmem>>, vector<1x32xf32>,
    %104 = vector.extract_strided_slice %5 {offsets = [5, 0], sizes = [1, 128], strides = [1, 1]} : vector<8x128xf32> to vector<1x128xf32>
    %cst_27 = arith.constant dense<0.000000e+00> : vector<1x128xf32>
    %105 = tpu.matmul %102, %6, %cst_27 {dimension_numbers = #tpu.dot_dimension_numbers<[1], [0], [0], [1], [0, 0, 1, 1], [], []>} : vector<1x32xf32>, vector<32x128xf32>, vector<1x128xf32> -> vector<1x128xf32>
    %106 = arith.addf %104, %105 : vector<1x128xf32>
    %107 = arith.negf %106 : vector<1x128xf32>
    %108 = math.exp %107 : vector<1x128xf32>
    %cst_28 = arith.constant 1.000000e+00 : f32
    %109 = vector.broadcast %cst_28 : f32 to vector<1x128xf32>
    %110 = arith.addf %109, %108 : vector<1x128xf32>
    %111 = arith.divf %109, %110 : vector<1x128xf32>
    %112 = vector.extract_strided_slice %111 {offsets = [0, 0], sizes = [1, 32], strides = [1, 1]} : vector<1x128xf32> to vector<1x32xf32>
    %113 = vector.extract_strided_slice %111 {offsets = [0, 32], sizes = [1, 32], strides = [1, 1]} : vector<1x128xf32> to vector<1x32xf32>
    %114 = vector.extract_strided_slice %111 {offsets = [0, 96], sizes = [1, 32], strides = [1, 1]} : vector<1x128xf32> to vector<1x32xf32>
    %115 = vector.extract_strided_slice %106 {offsets = [0, 64], sizes = [1, 32], strides = [1, 1]} : vector<1x128xf32> to vector<1x32xf32>
    %116 = math.tanh %115 : vector<1x32xf32>
    %117 = arith.mulf %113, %100 : vector<1x32xf32>
    %118 = arith.mulf %112, %116 : vector<1x32xf32>
    %119 = arith.addf %117, %118 : vector<1x32xf32>
    %120 = math.tanh %119 : vector<1x32xf32>
    %121 = arith.mulf %114, %120 : vector<1x32xf32>
    %c5 = arith.constant 5 : index
    %c0_29 = arith.constant 0 : index
    %122 = vector.load %arg11[%c5, %c0_29] : memref<8x32xf32, #tpu.memory_space<vmem>>, vector<1x32xf32>
    tpu.vector_store %arg11[%c5, %c0_29], %121 {strides = array<i32>} : memref<8x32xf32, #tpu.memory_space<vmem>>, vector<1x32xf32>,
    %123 = vector.extract_strided_slice %5 {offsets = [6, 0], sizes = [1, 128], strides = [1, 1]} : vector<8x128xf32> to vector<1x128xf32>
    %cst_30 = arith.constant dense<0.000000e+00> : vector<1x128xf32>
    %124 = tpu.matmul %121, %6, %cst_30 {dimension_numbers = #tpu.dot_dimension_numbers<[1], [0], [0], [1], [0, 0, 1, 1], [], []>} : vector<1x32xf32>, vector<32x128xf32>, vector<1x128xf32> -> vector<1x128xf32>
    %125 = arith.addf %123, %124 : vector<1x128xf32>
    %126 = arith.negf %125 : vector<1x128xf32>
    %127 = math.exp %126 : vector<1x128xf32>
    %cst_31 = arith.constant 1.000000e+00 : f32
    %128 = vector.broadcast %cst_31 : f32 to vector<1x128xf32>
    %129 = arith.addf %128, %127 : vector<1x128xf32>
    %130 = arith.divf %128, %129 : vector<1x128xf32>
    %131 = vector.extract_strided_slice %130 {offsets = [0, 0], sizes = [1, 32], strides = [1, 1]} : vector<1x128xf32> to vector<1x32xf32>
    %132 = vector.extract_strided_slice %130 {offsets = [0, 32], sizes = [1, 32], strides = [1, 1]} : vector<1x128xf32> to vector<1x32xf32>
    %133 = vector.extract_strided_slice %130 {offsets = [0, 96], sizes = [1, 32], strides = [1, 1]} : vector<1x128xf32> to vector<1x32xf32>
    %134 = vector.extract_strided_slice %125 {offsets = [0, 64], sizes = [1, 32], strides = [1, 1]} : vector<1x128xf32> to vector<1x32xf32>
    %135 = math.tanh %134 : vector<1x32xf32>
    %136 = arith.mulf %132, %119 : vector<1x32xf32>
    %137 = arith.mulf %131, %135 : vector<1x32xf32>
    %138 = arith.addf %136, %137 : vector<1x32xf32>
    %139 = math.tanh %138 : vector<1x32xf32>
    %140 = arith.mulf %133, %139 : vector<1x32xf32>
    %c6 = arith.constant 6 : index
    %c0_32 = arith.constant 0 : index
    %141 = vector.load %arg11[%c6, %c0_32] : memref<8x32xf32, #tpu.memory_space<vmem>>, vector<1x32xf32>
    tpu.vector_store %arg11[%c6, %c0_32], %140 {strides = array<i32>} : memref<8x32xf32, #tpu.memory_space<vmem>>, vector<1x32xf32>,
    %142 = vector.extract_strided_slice %5 {offsets = [7, 0], sizes = [1, 128], strides = [1, 1]} : vector<8x128xf32> to vector<1x128xf32>
    %cst_33 = arith.constant dense<0.000000e+00> : vector<1x128xf32>
    %143 = tpu.matmul %140, %6, %cst_33 {dimension_numbers = #tpu.dot_dimension_numbers<[1], [0], [0], [1], [0, 0, 1, 1], [], []>} : vector<1x32xf32>, vector<32x128xf32>, vector<1x128xf32> -> vector<1x128xf32>
    %144 = arith.addf %142, %143 : vector<1x128xf32>
    %145 = arith.negf %144 : vector<1x128xf32>
    %146 = math.exp %145 : vector<1x128xf32>
    %cst_34 = arith.constant 1.000000e+00 : f32
    %147 = vector.broadcast %cst_34 : f32 to vector<1x128xf32>
    %148 = arith.addf %147, %146 : vector<1x128xf32>
    %149 = arith.divf %147, %148 : vector<1x128xf32>
    %150 = vector.extract_strided_slice %149 {offsets = [0, 0], sizes = [1, 32], strides = [1, 1]} : vector<1x128xf32> to vector<1x32xf32>
    %151 = vector.extract_strided_slice %149 {offsets = [0, 32], sizes = [1, 32], strides = [1, 1]} : vector<1x128xf32> to vector<1x32xf32>
    %152 = vector.extract_strided_slice %149 {offsets = [0, 96], sizes = [1, 32], strides = [1, 1]} : vector<1x128xf32> to vector<1x32xf32>
    %153 = vector.extract_strided_slice %144 {offsets = [0, 64], sizes = [1, 32], strides = [1, 1]} : vector<1x128xf32> to vector<1x32xf32>
    %154 = math.tanh %153 : vector<1x32xf32>
    %155 = arith.mulf %151, %138 : vector<1x32xf32>
    %156 = arith.mulf %150, %154 : vector<1x32xf32>
    %157 = arith.addf %155, %156 : vector<1x32xf32>
    %158 = math.tanh %157 : vector<1x32xf32>
    %159 = arith.mulf %152, %158 : vector<1x32xf32>
    %c7 = arith.constant 7 : index
    %c0_35 = arith.constant 0 : index
    %160 = vector.load %arg11[%c7, %c0_35] : memref<8x32xf32, #tpu.memory_space<vmem>>, vector<1x32xf32>
    tpu.vector_store %arg11[%c7, %c0_35], %159 {strides = array<i32>} : memref<8x32xf32, #tpu.memory_space<vmem>>, vector<1x32xf32>,
    %c0_36 = arith.constant 0 : index
    %c0_37 = arith.constant 0 : index
    %161 = vector.load %arg9[%c0_36, %c0_37] : memref<1x32xf32, #tpu.memory_space<vmem>>, vector<1x32xf32>
    tpu.vector_store %arg9[%c0_36, %c0_37], %159 {strides = array<i32>} : memref<1x32xf32, #tpu.memory_space<vmem>>, vector<1x32xf32>,
    %c0_38 = arith.constant 0 : index
    %c0_39 = arith.constant 0 : index
    %162 = vector.load %arg10[%c0_38, %c0_39] : memref<1x32xf32, #tpu.memory_space<vmem>>, vector<1x32xf32>
    tpu.vector_store %arg10[%c0_38, %c0_39], %157 {strides = array<i32>} : memref<1x32xf32, #tpu.memory_space<vmem>>, vector<1x32xf32>,
    %c0_40 = arith.constant 0 : index
    %c0_41 = arith.constant 0 : index
    %163 = vector.load %arg11[%c0_40, %c0_41] : memref<8x32xf32, #tpu.memory_space<vmem>>, vector<8x32xf32>
    %c0_42 = arith.constant 0 : index
    %c0_43 = arith.constant 0 : index
    %164 = vector.load %arg6[%c0_42, %c0_43] : memref<32x4xf32, #tpu.memory_space<vmem>>, vector<32x4xf32>
    %cst_44 = arith.constant dense<0.000000e+00> : vector<8x4xf32>
    %165 = tpu.matmul %163, %164, %cst_44 {dimension_numbers = #tpu.dot_dimension_numbers<[1], [0], [0], [1], [0, 0, 1, 1], [], []>} : vector<8x32xf32>, vector<32x4xf32>, vector<8x4xf32> -> vector<8x4xf32>
    %c0_45 = arith.constant 0 : index
    %c0_46 = arith.constant 0 : index
    %166 = vector.load %arg7[%c0_45, %c0_46] : memref<1x4xf32, #tpu.memory_space<vmem>>, vector<1x4xf32>
    %167 = vector.broadcast %166 : vector<1x4xf32> to vector<8x4xf32>
    %168 = arith.addf %165, %167 : vector<8x4xf32>
    %169 = tpu.iota {dimensions = array<i32: 1>} : vector<8x4xi32>
    %c2_i32 = arith.constant 2 : i32
    %170 = vector.broadcast %c2_i32 : i32 to vector<8x4xi32>
    %171 = arith.cmpi slt, %169, %170 : vector<8x4xi32>
    %172 = math.tanh %168 : vector<8x4xf32>
    %cst_47 = arith.constant 3.14159274 : f32
    %173 = vector.broadcast %cst_47 : f32 to vector<8x4xf32>
    %174 = arith.mulf %172, %173 : vector<8x4xf32>
    %175 = arith.select %171, %174, %168 : vector<8x4xi1>, vector<8x4xf32>
    %c0_48 = arith.constant 0 : index
    %c0_49 = arith.constant 0 : index
    %176 = vector.load %arg8[%c0_48, %c0_49] : memref<8x4xf32, #tpu.memory_space<vmem>>, vector<8x4xf32>
    tpu.vector_store %arg8[%c0_48, %c0_49], %175 {strides = array<i32>} : memref<8x4xf32, #tpu.memory_space<vmem>>, vector<8x4xf32>,
    return
  }
}

</mosaic_0001>

<bundles_post_ra>
// kernel: tpu_custom_call.1
= control target key start
LH: loop header
LB: loop body
LE: loop exit
PB: predicated region body
PF: predicated region fallthrough
CT: control target
= control target key end

     0   :  { %16 = vsyncpa [#allocation4], 0  ;;  %s1833_s0 = inlined_call_operand.vmem [shape: f32[8,6], index: 0, kind: input, shape index: {}]   ;;  %s1834_s1 = inlined_call_operand.vmem [shape: f32[1,32], index: 1, kind: input, shape index: {}]   ;;  %s1835_s2 = inlined_call_operand.hbm [shape: f32[1,32], index: 2, kind: input, shape index: {}]   ;;  %s1836_s3 = inlined_call_operand.hbm [shape: f32[6,128], index: 3, kind: input, shape index: {}]   ;;  %s1837_s4 = inlined_call_operand.vmem [shape: f32[32,128], index: 4, kind: input, shape index: {}]   ;;  %s1838_s5 = inlined_call_operand.hbm [shape: f32[1,128], index: 5, kind: input, shape index: {}]   ;;  %s1839_s6 = inlined_call_operand.vmem [shape: f32[32,4], index: 6, kind: input, shape index: {}]   ;;  %s1840_s7 = inlined_call_operand.vmem [shape: f32[1,4], index: 7, kind: input, shape index: {}]   ;;  %s1841_s8 = inlined_call_operand.vmem [shape: f32[8,4], index: 8, kind: output, shape index: {0}]   ;;  %s1842_s9 = inlined_call_operand.hbm [shape: f32[1,32], index: 9, kind: output, shape index: {1}]   ;;  %s1843_s10 = inlined_call_operand.hbm [shape: f32[1,32], index: 10, kind: output, shape index: {2}]  }
   0x1   :  { %17 = vsyncpa [#allocation7], 0 }
   0x2   :  { %18 = vsyncpa [#allocation5], 0 }
   0x3   :  { %19 = vsyncpa [#allocation11], 0  ;;  %s1546_s13 = smov [#allocation6]   ;;  %s1547_s15 = smov [#allocation3]  }
   0x4   :  { %s40_s14 = sshll.u32 %s1546_s13, 4  ;;  %s30_s16 = sshll.u32 %s1547_s15, 4  ;;  %s41_s14 = int_to_ptr.vmem [resolvable:$true] %s40_s14  ;;  %s31_s16 = int_to_ptr.vmem [resolvable:$true] %s30_s16 }
   0x5   :  { %s1446_s17 = scalar_lea.vmem %s41_s14, 128  ;;  %p1451_p1 = scmp.lt.s32.totalorder %s41_s14, %s41_s14 }
   0x6   :  { %p1447_p0 = scmp.ne.s32.totalorder %s41_s14, %s1446_s17  ;;  %p1452_p2 = scmp.lt.s32.totalorder %s1446_s17, %s1446_s17 }
   0x8   :  { %p1453_p3 = por %p1452_p2, %p1451_p1 }
   0xa   :  { %p1454_p4 = pnand %p1453_p3, %p1447_p0 }
   0xc   :  { %1457 = shalt.err (!%p1454_p4)
}
   0xd   :  { %43 = dma.hbm_to_vmem [thread:$0]  %s1836_s3, 128, %s41_s14, [#allocation7]  }
   0xe   :  { %s1466_s20 = scalar_lea.vmem %s31_s16, 16  ;;  %s1470_s21 = scalar_lea.vmem %s31_s16, 32 }
   0xf   :  { %p1467_p5 = scmp.ne.s32.totalorder %s31_s16, %s1466_s20  ;;  %p1471_p6 = scmp.lt.s32.totalorder %s31_s16, %s31_s16 }
  0x10   :  { %p1472_p7 = scmp.lt.s32.totalorder %s1470_s21, %s1466_s20 }
  0x12   :  { %p1473_p8 = por %p1472_p7, %p1471_p6 }
  0x14   :  { %p1474_p9 = pnand %p1473_p8, %p1467_p5 }
  0x16   :  { %1477 = shalt.err (!%p1474_p9)
}
  0x17   :  { %33 = dma.hbm_to_vmem [thread:$0]  %s1835_s2, 16, %s31_s16, [#allocation4]  }
  0x18   :  { %s1548_s24 = smov [#allocation8]  }
  0x19   :  { %s52_s25 = sshll.u32 %s1548_s24, 4  ;;  %s53_s25 = int_to_ptr.vmem [resolvable:$true] %s52_s25 }
  0x1a   :  { %s1486_s26 = scalar_lea.vmem %s53_s25, 16  ;;  %s1490_s27 = scalar_lea.vmem %s53_s25, 32 }
  0x1b   :  { %p1487_p10 = scmp.ne.s32.totalorder %s53_s25, %s1486_s26  ;;  %p1491_p11 = scmp.lt.s32.totalorder %s53_s25, %s53_s25 }
  0x1c   :  { %p1492_p12 = scmp.lt.s32.totalorder %s1490_s27, %s1486_s26 }
  0x1e   :  { %p1493_p13 = por %p1492_p12, %p1491_p11 }
  0x20   :  { %p1494_p0 = pnand %p1493_p13, %p1487_p10 }
  0x22   :  { %1497 = shalt.err (!%p1494_p0)
}
  0x23   :  { %55 = dma.hbm_to_vmem [thread:$0]  %s1838_s5, 16, %s53_s25, [#allocation7]  }
  0x24   :  { %1538 = dma.done.wait [#allocation4], 16  }
  0x25   :  { %1539 = vsyncadd [#allocation4], 4294967280 }
  0x26   :  { %1540 = dma.done.wait [#allocation7], 144  }
  0x27   :  { %1541 = vsyncadd [#allocation7], 4294967152  ;;  %v1549_v0 = vmov 0.0   ;;  %vm1550_vm0 = vmmov 0   ;;  %vm82_vm1 = vcmask 1045504   ;;  %vm78_vm2 = vcmask 48128  }
  0x28   :  { %1263 = vmatprep.subr.mxu1 %v1549_v0  ;;  %1258 = vmatprep.subr.mxu0 %v1549_v0  ;;  %v1629_v1 = vld [vmem:[%s1837_s4 + $0x18] sm:$0xff]  ;;  %v70_v2 = vld [vmem:[#allocation6] sm:$0x3f]  ;;  %v1634_v3 = vld [vmem:[%s1837_s4 + $0x10] sm:$0xff]  ;;  %vm162_vm3 = vcmask 261120   ;;  %vm273_vm4 = vcmask 253952  }
  0x29   :  { %1260 = vmatprep.mubr.msk.f32.mxu0 %vm1550_vm0, %v1549_v0  ;;  %1271 = vmatprep.mubr.msk.f32.mxu1 %vm1550_vm0, %v1549_v0  ;;  %v69_v4 = vld [vmem:[%s1833_s0] sm:$0xff]  ;;  %v1644_v5 = vld [vmem:[%s1837_s4 + $0x8] sm:$0xff]  ;;  %v1189_v8 = vld [vmem:[#allocation8] ss:$0 sm:$0xff]  ;;  %vm382_vm5 = vcmask 254977   ;;  %vm606_vm6 = vcmask 257027  }
  0x2a   :  { %1264 = vmatpush3.msra.mxu1 %v1629_v1  ;;  %1259 = vmatpush3.msk.msra.mxu0 %vm82_vm1, %v70_v2  ;;  %v1652_v6 = vld [vmem:[%s1837_s4] sm:$0xff]  ;;  %v1194_v16 = vld [vmem:[#allocation3] ss:$0 sm:$0xff]  ;;  %s1552_s4 = smov 32   ;;  %vm830_vm7 = vcmask 259077   ;;  %s1553_s18 = smov 96  }
  0x2b   :  { %1265 = vmatprep.subr.mxu1 %v1549_v0  ;;  %1261 = vmatmul.mubr.msk.f32.vlgmr.msra.gmra.mxu0 %vm78_vm2, %v69_v4  ;;  %v160_v7 = vld [vmem:[%s1834_s1] sm:$0x1]  ;;  %s1551_s1 = smov 64   ;;  %vm494_vm8 = vcmask 256002   ;;  %vm718_vm9 = vcmask 258052   ;;  %vm942_vm10 = vcmask 260102  }
  0x2c   :  { %1266 = vmatpush3.msra.mxu1 %v1634_v3  ;;  %1274 = vmatprep.subr.mxu0 %v1549_v0  ;;  %vm1054_vm11 = vcmask 261127   ;;  %s1555_s3 = smov [#allocation10]  }
  0x2d   :  { %1267 = vmatprep.subr.mxu1 %v1549_v0  ;;  %1275 = vmatpush3.msra.mxu0 %v1629_v1  ;;  %s1173_s28 = sshll.u32 %s1555_s3, 4  ;;  %s1174_s28 = int_to_ptr.vmem [resolvable:$true] %s1173_s28 }
  0x2e   :  { %1268 = vmatpush3.msra.mxu1 %v1644_v5  ;;  %1276 = vmatprep.subr.mxu0 %v1549_v0 }
  0x2f   :  { %1269 = vmatprep.subr.mxu1 %v1549_v0  ;;  %1277 = vmatpush3.msra.mxu0 %v1634_v3 }
  0x30   :  { %1270 = vmatpush3.msra.mxu1 %v1652_v6  ;;  %1278 = vmatprep.subr.mxu0 %v1549_v0 }
  0x31   :  { %1272 = vmatmul.mubr.msk.f32.vlgmr.msra.gmra.mxu1 %vm162_vm3, %v160_v7  ;;  %1279 = vmatpush3.msra.mxu0 %v1644_v5 }
  0x32   :  { %1280 = vmatprep.subr.mxu0 %v1549_v0  ;;  %1282 = vmatprep.mubr.msk.f32.mxu0 %vm1550_vm0, %v1549_v0 }
  0x33   :  { %1281 = vmatpush3.msra.mxu0 %v1652_v6  ;;  %1285 = vmatprep.subr.mxu1 %v1549_v0 }
  0x34   :  { %1286 = vmatpush3.msra.mxu1 %v1629_v1  ;;  %1293 = vmatprep.mubr.msk.f32.mxu1 %vm1550_vm0, %v1549_v0 }
  0x35   :  { %1287 = vmatprep.subr.mxu1 %v1549_v0  ;;  %1296 = vmatprep.subr.mxu0 %v1549_v0 }
  0x36   :  { %1288 = vmatpush3.msra.mxu1 %v1634_v3 }
  0x37   :  { %1289 = vmatprep.subr.mxu1 %v1549_v0 }
  0x38   :  { %1290 = vmatpush3.msra.mxu1 %v1644_v5 }
  0x39   :  { %1291 = vmatprep.subr.mxu1 %v1549_v0 }
  0x3a   :  { %1292 = vmatpush3.msra.mxu1 %v1652_v6 }
  0x3b   :  { %1307 = vmatprep.subr.mxu1 %v1549_v0 }
  0xeb   :  { %v152_v9 = vpop.f32.mrf.mxu0 }
  0xec   :  { %v1682_v11 = vadd.f32 %v1189_v8, %v152_v9 }
  0xed   :  { %v1262_v10 = vpop.f32.mrf.mxu0 }
  0xf1   :  { %v232_v12 = vpop.f32.mrf.mxu1 }
  0xf2   :  { %v236_v13 = vadd.f32 %v232_v12, %v1682_v11 }
  0xf3   :  { %v1273_v14 = vpop.f32.mrf.mxu1 }
  0xf4   :  { %1372 = vtanh.f32 %v236_v13  ;;  %v1193_v17 = vmul.f32 -1.442695, %v236_v13 }
  0xf6   :  { %1374 = vpow2.f32 %v1193_v17 }
 0x101   :  { %v1373_v15 = vpop.eup %1372 }
 0x102   :  { %254 = vrot.lane.b32.xlu0 %v1373_v15, %s1551_s1 }
 0x103   :  { %v1375_v18 = vpop.eup %1374 }
 0x104   :  { %v240_v19 = vadd.f32 1.0, %v1375_v18 }
 0x106   :  { %249 = vrot.lane.b32.xlu0 %v1194_v16, %s1552_s4  ;;  %1376 = vrcp.f32 %v240_v19 }
 0x113   :  { %v1377_v20 = vpop.eup %1376 }
 0x174   :  { %v255_v21 = vpop.permute.xlu0 %254 }
 0x175   :  { %v257_v22 = vmul.f32 %v1377_v20, %v255_v21 }
 0x177   :  { %259 = vrot.lane.b32.xlu1 %v257_v22, %s1552_s4 }
 0x178   :  { %v250_v23 = vpop.permute.xlu0 %249 }
 0x179   :  { %v252_v24 = vmul.f32 %v1377_v20, %v250_v23 }
 0x1e9   :  { %v260_v25 = vpop.permute.xlu1 %259 }
 0x1ea   :  { %v262_v26 = vadd.f32 %v260_v25, %v252_v24 }
 0x1ec   :  { %1378 = vtanh.f32 %v262_v26  ;;  %v359_v42 = vrot.slane %v262_v26, 7 }
 0x1f9   :  { %v1379_v27 = vpop.eup %1378 }
 0x1fa   :  { %265 = vrot.lane.b32.xlu1 %v1379_v27, %s1551_s1 }
 0x26c   :  { %v266_v28 = vpop.permute.xlu1 %265 }
 0x26d   :  { %v268_v29 = vmul.f32 %v1377_v20, %v266_v28 }
 0x26f   :  { %270 = vrot.lane.b32.xlu0 %v268_v29, %s1552_s4 }
 0x2e1   :  { %v271_v30 = vpop.permute.xlu0 %270 }
 0x2e2   :  { %274 = vst.msk [vmem:[#allocation2] sm:$0x1] %vm273_vm4, %v271_v30  ;;  %1283 = vmatmul.mubr.msk.f32.vlgmr.msra.gmra.mxu0 %vm162_vm3, %v271_v30 }
 0x2e3   :  { %1297 = vmatpush3.msra.mxu0 %v1629_v1  ;;  %1304 = vmatprep.mubr.msk.f32.mxu0 %vm1550_vm0, %v1549_v0 }
 0x2e4   :  { %1298 = vmatprep.subr.mxu0 %v1549_v0 }
 0x2e5   :  { %1299 = vmatpush3.msra.mxu0 %v1634_v3 }
 0x2e6   :  { %1300 = vmatprep.subr.mxu0 %v1549_v0 }
 0x2e7   :  { %1301 = vmatpush3.msra.mxu0 %v1644_v5 }
 0x2e8   :  { %1302 = vmatprep.subr.mxu0 %v1549_v0 }
 0x2e9   :  { %1303 = vmatpush3.msra.mxu0 %v1652_v6 }
 0x2ea   :  { %1318 = vmatprep.subr.mxu0 %v1549_v0 }
 0x3a2   :  { %v343_v31 = vpop.f32.mrf.mxu0 }
 0x3a3   :  { %v348_v32 = vrot.slane %v343_v31, 7 }
 0x3a4   :  { %v1284_v33 = vpop.f32.mrf.mxu0 }
 0x3a5   :  { %v350_v34 = vadd.f32 %v348_v32, %v1682_v11 }
 0x3a7   :  { %1380 = vtanh.f32 %v350_v34  ;;  %v1196_v36 = vmul.f32 -1.442695, %v350_v34 }
 0x3a9   :  { %1382 = vpow2.f32 %v1196_v36 }
 0x3b4   :  { %v1381_v35 = vpop.eup %1380 }
 0x3b5   :  { %363 = vrot.lane.b32.xlu1 %v1381_v35, %s1551_s1 }
 0x3b6   :  { %v1383_v37 = vpop.eup %1382 }
 0x3b7   :  { %v354_v38 = vadd.f32 1.0, %v1383_v37 }
 0x3b9   :  { %1384 = vrcp.f32 %v354_v38 }
 0x3c6   :  { %v1385_v39 = vpop.eup %1384 }
 0x3c7   :  { %v361_v43 = vmul.f32 %v1385_v39, %v359_v42 }
 0x427   :  { %v364_v40 = vpop.permute.xlu1 %363 }
 0x428   :  { %v366_v41 = vmul.f32 %v1385_v39, %v364_v40 }
 0x42a   :  { %368 = vrot.lane.b32.xlu0 %v366_v41, %s1552_s4 }
 0x49c   :  { %v369_v44 = vpop.permute.xlu0 %368 }
 0x49d   :  { %v371_v45 = vadd.f32 %v369_v44, %v361_v43 }
 0x49f   :  { %1386 = vtanh.f32 %v371_v45  ;;  %v471_v62 = vrot.slane %v371_v45, 7 }
 0x4ac   :  { %v1387_v46 = vpop.eup %1386 }
 0x4ad   :  { %374 = vrot.lane.b32.xlu1 %v1387_v46, %s1551_s1 }
 0x51f   :  { %v375_v47 = vpop.permute.xlu1 %374 }
 0x520   :  { %v1705_v48 = vmul.f32 %v1385_v39, %v375_v47 }
 0x522   :  { %v384_v49 = vrot.slane %v1705_v48, 1 }
 0x524   :  { %385 = vrot.lane.b32.xlu0 %v384_v49, %s1552_s4 }
 0x596   :  { %v386_v50 = vpop.permute.xlu0 %385 }
 0x597   :  { %1294 = vmatmul.mubr.msk.f32.vlgmr.msra.gmra.mxu1 %vm162_vm3, %v386_v50 }
 0x598   :  { %1308 = vmatpush3.msra.mxu1 %v1629_v1  ;;  %1315 = vmatprep.mubr.msk.f32.mxu1 %vm1550_vm0, %v1549_v0 }
 0x599   :  { %1309 = vmatprep.subr.mxu1 %v1549_v0 }
 0x59a   :  { %1310 = vmatpush3.msra.mxu1 %v1634_v3 }
 0x59b   :  { %1311 = vmatprep.subr.mxu1 %v1549_v0 }
 0x59c   :  { %1312 = vmatpush3.msra.mxu1 %v1644_v5 }
 0x59d   :  { %1313 = vmatprep.subr.mxu1 %v1549_v0 }
 0x59e   :  { %1314 = vmatpush3.msra.mxu1 %v1652_v6 }
 0x59f   :  { %1329 = vmatprep.subr.mxu1 %v1549_v0 }
 0x657   :  { %v455_v51 = vpop.f32.mrf.mxu1 }
 0x658   :  { %v460_v52 = vrot.slane %v455_v51, 6 }
 0x659   :  { %v1295_v53 = vpop.f32.mrf.mxu1 }
 0x65a   :  { %v462_v54 = vadd.f32 %v460_v52, %v1682_v11 }
 0x65c   :  { %1388 = vtanh.f32 %v462_v54  ;;  %v1198_v56 = vmul.f32 -1.442695, %v462_v54 }
 0x65e   :  { %1390 = vpow2.f32 %v1198_v56 }
 0x669   :  { %v1389_v55 = vpop.eup %1388 }
 0x66a   :  { %475 = vrot.lane.b32.xlu1 %v1389_v55, %s1551_s1 }
 0x66b   :  { %v1391_v57 = vpop.eup %1390 }
 0x66c   :  { %v466_v58 = vadd.f32 1.0, %v1391_v57 }
 0x66e   :  { %1392 = vrcp.f32 %v466_v58 }
 0x67b   :  { %v1393_v59 = vpop.eup %1392 }
 0x67c   :  { %v473_v63 = vmul.f32 %v1393_v59, %v471_v62 }
 0x6dc   :  { %v476_v60 = vpop.permute.xlu1 %475 }
 0x6dd   :  { %v478_v61 = vmul.f32 %v1393_v59, %v476_v60 }
 0x6df   :  { %480 = vrot.lane.b32.xlu0 %v478_v61, %s1552_s4 }
 0x751   :  { %v481_v2 = vpop.permute.xlu0 %480 }
 0x752   :  { %v483_v4 = vadd.f32 %v481_v2, %v473_v63 }
 0x754   :  { %1394 = vtanh.f32 %v483_v4  ;;  %v583_v24 = vrot.slane %v483_v4, 7 }
 0x761   :  { %v1395_v7 = vpop.eup %1394 }
 0x762   :  { %486 = vrot.lane.b32.xlu1 %v1395_v7, %s1551_s1 }
 0x7d4   :  { %v487_v8 = vpop.permute.xlu1 %486 }
 0x7d5   :  { %v1724_v9 = vmul.f32 %v1393_v59, %v487_v8 }
 0x7d7   :  { %v496_v10 = vrot.slane %v1724_v9, 2 }
 0x7d9   :  { %497 = vrot.lane.b32.xlu0 %v496_v10, %s1552_s4 }
 0x84b   :  { %v498_v12 = vpop.permute.xlu0 %497 }
 0x84c   :  { %1305 = vmatmul.mubr.msk.f32.vlgmr.msra.gmra.mxu0 %vm162_vm3, %v498_v12 }
 0x84d   :  { %1319 = vmatpush3.msra.mxu0 %v1629_v1  ;;  %1326 = vmatprep.mubr.msk.f32.mxu0 %vm1550_vm0, %v1549_v0 }
 0x84e   :  { %1320 = vmatprep.subr.mxu0 %v1549_v0 }
 0x84f   :  { %1321 = vmatpush3.msra.mxu0 %v1634_v3 }
 0x850   :  { %1322 = vmatprep.subr.mxu0 %v1549_v0 }
 0x851   :  { %1323 = vmatpush3.msra.mxu0 %v1644_v5 }
 0x852   :  { %1324 = vmatprep.subr.mxu0 %v1549_v0 }
 0x853   :  { %1325 = vmatpush3.msra.mxu0 %v1652_v6 }
 0x854   :  { %1340 = vmatprep.subr.mxu0 %v1549_v0 }
 0x90c   :  { %v567_v13 = vpop.f32.mrf.mxu0 }
 0x90d   :  { %v572_v14 = vrot.slane %v567_v13, 5 }
 0x90e   :  { %v1306_v15 = vpop.f32.mrf.mxu0 }
 0x90f   :  { %v574_v16 = vadd.f32 %v572_v14, %v1682_v11 }
 0x911   :  { %1396 = vtanh.f32 %v574_v16  ;;  %v1200_v18 = vmul.f32 -1.442695, %v574_v16 }
 0x913   :  { %1398 = vpow2.f32 %v1200_v18 }
 0x91e   :  { %v1397_v17 = vpop.eup %1396 }
 0x91f   :  { %587 = vrot.lane.b32.xlu1 %v1397_v17, %s1551_s1 }
 0x920   :  { %v1399_v19 = vpop.eup %1398 }
 0x921   :  { %v578_v20 = vadd.f32 1.0, %v1399_v19 }
 0x923   :  { %1400 = vrcp.f32 %v578_v20 }
 0x930   :  { %v1401_v21 = vpop.eup %1400 }
 0x931   :  { %v585_v25 = vmul.f32 %v1401_v21, %v583_v24 }
 0x991   :  { %v588_v22 = vpop.permute.xlu1 %587 }
 0x992   :  { %v590_v23 = vmul.f32 %v1401_v21, %v588_v22 }
 0x994   :  { %592 = vrot.lane.b32.xlu0 %v590_v23, %s1552_s4 }
 0xa06   :  { %v593_v26 = vpop.permute.xlu0 %592 }
 0xa07   :  { %v595_v27 = vadd.f32 %v593_v26, %v585_v25 }
 0xa09   :  { %1402 = vtanh.f32 %v595_v27  ;;  %v695_v44 = vrot.slane %v595_v27, 7 }
 0xa16   :  { %v1403_v28 = vpop.eup %1402 }
 0xa17   :  { %598 = vrot.lane.b32.xlu1 %v1403_v28, %s1551_s1 }
 0xa89   :  { %v599_v29 = vpop.permute.xlu1 %598 }
 0xa8a   :  { %v1743_v30 = vmul.f32 %v1401_v21, %v599_v29 }
 0xa8c   :  { %v608_v31 = vrot.slane %v1743_v30, 3 }
 0xa8e   :  { %609 = vrot.lane.b32.xlu0 %v608_v31, %s1552_s4 }
 0xb00   :  { %v610_v32 = vpop.permute.xlu0 %609 }
 0xb01   :  { %1316 = vmatmul.mubr.msk.f32.vlgmr.msra.gmra.mxu1 %vm162_vm3, %v610_v32 }
 0xb02   :  { %1330 = vmatpush3.msra.mxu1 %v1629_v1  ;;  %1337 = vmatprep.mubr.msk.f32.mxu1 %vm1550_vm0, %v1549_v0 }
 0xb03   :  { %1331 = vmatprep.subr.mxu1 %v1549_v0 }
 0xb04   :  { %1332 = vmatpush3.msra.mxu1 %v1634_v3 }
 0xb05   :  { %1333 = vmatprep.subr.mxu1 %v1549_v0 }
 0xb06   :  { %1334 = vmatpush3.msra.mxu1 %v1644_v5 }
 0xb07   :  { %1335 = vmatprep.subr.mxu1 %v1549_v0 }
 0xb08   :  { %1336 = vmatpush3.msra.mxu1 %v1652_v6 }
 0xb09   :  { %1351 = vmatprep.subr.mxu1 %v1549_v0 }
 0xbc1   :  { %v679_v33 = vpop.f32.mrf.mxu1 }
 0xbc2   :  { %v684_v34 = vrot.slane %v679_v33, 4 }
 0xbc3   :  { %v1317_v35 = vpop.f32.mrf.mxu1 }
 0xbc4   :  { %v686_v36 = vadd.f32 %v684_v34, %v1682_v11 }
 0xbc6   :  { %1404 = vtanh.f32 %v686_v36  ;;  %v1202_v38 = vmul.f32 -1.442695, %v686_v36 }
 0xbc8   :  { %1406 = vpow2.f32 %v1202_v38 }
 0xbd3   :  { %v1405_v37 = vpop.eup %1404 }
 0xbd4   :  { %699 = vrot.lane.b32.xlu1 %v1405_v37, %s1551_s1 }
 0xbd5   :  { %v1407_v39 = vpop.eup %1406 }
 0xbd6   :  { %v690_v40 = vadd.f32 1.0, %v1407_v39 }
 0xbd8   :  { %1408 = vrcp.f32 %v690_v40 }
 0xbe5   :  { %v1409_v41 = vpop.eup %1408 }
 0xbe6   :  { %v697_v45 = vmul.f32 %v1409_v41, %v695_v44 }
 0xc46   :  { %v700_v42 = vpop.permute.xlu1 %699 }
 0xc47   :  { %v702_v43 = vmul.f32 %v1409_v41, %v700_v42 }
 0xc49   :  { %704 = vrot.lane.b32.xlu0 %v702_v43, %s1552_s4 }
 0xcbb   :  { %v705_v46 = vpop.permute.xlu0 %704 }
 0xcbc   :  { %v707_v47 = vadd.f32 %v705_v46, %v697_v45 }
 0xcbe   :  { %1410 = vtanh.f32 %v707_v47 }
 0xccb   :  { %v1411_v49 = vpop.eup %1410 }
 0xccc   :  { %710 = vrot.lane.b32.xlu1 %v1411_v49, %s1551_s1 }
 0xd3e   :  { %v711_v50 = vpop.permute.xlu1 %710 }
 0xd3f   :  { %v1762_v51 = vmul.f32 %v1409_v41, %v711_v50 }
 0xd41   :  { %v720_v52 = vrot.slane %v1762_v51, 4 }
 0xd43   :  { %721 = vrot.lane.b32.xlu0 %v720_v52, %s1552_s4 }
 0xdb5   :  { %v722_v53 = vpop.permute.xlu0 %721 }
 0xdb6   :  { %1327 = vmatmul.mubr.msk.f32.vlgmr.msra.gmra.mxu0 %vm162_vm3, %v722_v53  ;;  %v1065_v53 = vld [vmem:[%s1839_s6 + $0x10] sm:$0xff] }
 0xdb7   :  { %1341 = vmatpush3.msra.mxu0 %v1629_v1  ;;  %1348 = vmatprep.mubr.msk.f32.mxu0 %vm1550_vm0, %v1549_v0 }
 0xdb8   :  { %1342 = vmatprep.subr.mxu0 %v1549_v0 }
 0xdb9   :  { %1343 = vmatpush3.msra.mxu0 %v1634_v3 }
 0xdba   :  { %1344 = vmatprep.subr.mxu0 %v1549_v0 }
 0xdbb   :  { %1345 = vmatpush3.msra.mxu0 %v1644_v5 }
 0xdbc   :  { %1346 = vmatprep.subr.mxu0 %v1549_v0 }
 0xdbd   :  { %1347 = vmatpush3.msra.mxu0 %v1652_v6  ;;  %v807_v6 = vrot.slane %v707_v47, 7 }
 0xe76   :  { %v791_v54 = vpop.f32.mrf.mxu0 }
 0xe77   :  { %v796_v55 = vrot.slane %v791_v54, 3 }
 0xe78   :  { %v1328_v56 = vpop.f32.mrf.mxu0 }
 0xe79   :  { %v798_v1 = vadd.f32 %v796_v55, %v1682_v11 }
 0xe7b   :  { %1412 = vtanh.f32 %v798_v1  ;;  %v1204_v58 = vmul.f32 -1.442695, %v798_v1 }
 0xe7d   :  { %1414 = vpow2.f32 %v1204_v58 }
 0xe88   :  { %v1413_v57 = vpop.eup %1412 }
 0xe89   :  { %811 = vrot.lane.b32.xlu1 %v1413_v57, %s1551_s1 }
 0xe8a   :  { %v1415_v3 = vpop.eup %1414 }
 0xe8b   :  { %v802_v59 = vadd.f32 1.0, %v1415_v3 }
 0xe8d   :  { %1416 = vrcp.f32 %v802_v59 }
 0xe9a   :  { %v1417_v60 = vpop.eup %1416 }
 0xe9b   :  { %v809_v62 = vmul.f32 %v1417_v60, %v807_v6 }
 0xefb   :  { %v812_v5 = vpop.permute.xlu1 %811 }
 0xefc   :  { %v814_v61 = vmul.f32 %v1417_v60, %v812_v5 }
 0xefe   :  { %816 = vrot.lane.b32.xlu0 %v814_v61, %s1552_s4 }
 0xf70   :  { %v817_v63 = vpop.permute.xlu0 %816 }
 0xf71   :  { %v819_v2 = vadd.f32 %v817_v63, %v809_v62 }
 0xf73   :  { %1418 = vtanh.f32 %v819_v2  ;;  %v919_v24 = vrot.slane %v819_v2, 7 }
 0xf80   :  { %v1419_v4 = vpop.eup %1418 }
 0xf81   :  { %822 = vrot.lane.b32.xlu1 %v1419_v4, %s1551_s1 }
 0xff3   :  { %v823_v7 = vpop.permute.xlu1 %822 }
 0xff4   :  { %v825_v8 = vmul.f32 %v1417_v60, %v823_v7 }
 0xff6   :  { %v832_v10 = vrot.slane %v825_v8, 5 }
 0xff8   :  { %833 = vrot.lane.b32.xlu0 %v832_v10, %s1552_s4 }
0x106a   :  { %v834_v12 = vpop.permute.xlu0 %833 }
0x106b   :  { %1338 = vmatmul.mubr.msk.f32.vlgmr.msra.gmra.mxu1 %vm162_vm3, %v834_v12 }
0x106c   :  { %1359 = vmatprep.mubr.msk.f32.mxu1 %vm1550_vm0, %v1549_v0 }
0x112b   :  { %v903_v13 = vpop.f32.mrf.mxu1 }
0x112c   :  { %v908_v14 = vrot.slane %v903_v13, 2 }
0x112d   :  { %v1339_v15 = vpop.f32.mrf.mxu1 }
0x112e   :  { %v910_v16 = vadd.f32 %v908_v14, %v1682_v11 }
0x1130   :  { %1420 = vtanh.f32 %v910_v16  ;;  %v1206_v18 = vmul.f32 -1.442695, %v910_v16 }
0x1132   :  { %1422 = vpow2.f32 %v1206_v18 }
0x113d   :  { %v1421_v17 = vpop.eup %1420 }
0x113e   :  { %923 = vrot.lane.b32.xlu1 %v1421_v17, %s1551_s1 }
0x113f   :  { %v1423_v19 = vpop.eup %1422 }
0x1140   :  { %v914_v20 = vadd.f32 1.0, %v1423_v19 }
0x1142   :  { %1424 = vrcp.f32 %v914_v20 }
0x114f   :  { %v1425_v21 = vpop.eup %1424 }
0x1150   :  { %v921_v25 = vmul.f32 %v1425_v21, %v919_v24 }
0x11b0   :  { %v924_v22 = vpop.permute.xlu1 %923 }
0x11b1   :  { %v926_v23 = vmul.f32 %v1425_v21, %v924_v22 }
0x11b3   :  { %928 = vrot.lane.b32.xlu0 %v926_v23, %s1552_s4 }
0x1225   :  { %v929_v26 = vpop.permute.xlu0 %928 }
0x1226   :  { %v931_v27 = vadd.f32 %v929_v26, %v921_v25 }
0x1228   :  { %1426 = vtanh.f32 %v931_v27 }
0x1235   :  { %v1427_v28 = vpop.eup %1426 }
0x1236   :  { %934 = vrot.lane.b32.xlu1 %v1427_v28, %s1551_s1 }
0x12a8   :  { %v935_v29 = vpop.permute.xlu1 %934 }
0x12a9   :  { %v937_v31 = vmul.f32 %v1425_v21, %v935_v29 }
0x12ab   :  { %v944_v32 = vrot.slane %v937_v31, 6 }
0x12ad   :  { %945 = vrot.lane.b32.xlu0 %v944_v32, %s1552_s4 }
0x131f   :  { %v946_v33 = vpop.permute.xlu0 %945 }
0x1320   :  { %1349 = vmatmul.mubr.msk.f32.vlgmr.msra.gmra.mxu0 %vm162_vm3, %v946_v33 }
0x13e0   :  { %v1015_v34 = vpop.f32.mrf.mxu0 }
0x13e1   :  { %v1020_v35 = vrot.slane %v1015_v34, 1 }
0x13e2   :  { %v1350_v36 = vpop.f32.mrf.mxu0 }
0x13e3   :  { %v1022_v37 = vadd.f32 %v1020_v35, %v1682_v11  ;;  %v1031_v11 = vrot.slane %v931_v27, 7 }
0x13e5   :  { %1428 = vtanh.f32 %v1022_v37  ;;  %v1208_v39 = vmul.f32 -1.442695, %v1022_v37 }
0x13e7   :  { %1430 = vpow2.f32 %v1208_v39 }
0x13f2   :  { %v1429_v38 = vpop.eup %1428 }
0x13f3   :  { %1035 = vrot.lane.b32.xlu1 %v1429_v38, %s1551_s1 }
0x13f4   :  { %v1431_v40 = vpop.eup %1430 }
0x13f5   :  { %v1026_v41 = vadd.f32 1.0, %v1431_v40 }
0x13f7   :  { %1432 = vrcp.f32 %v1026_v41 }
0x1404   :  { %v1433_v42 = vpop.eup %1432 }
0x1405   :  { %v1033_v45 = vmul.f32 %v1433_v42, %v1031_v11 }
0x1465   :  { %v1036_v43 = vpop.permute.xlu1 %1035 }
0x1466   :  { %v1038_v44 = vmul.f32 %v1433_v42, %v1036_v43 }
0x1468   :  { %1040 = vrot.lane.b32.xlu0 %v1038_v44, %s1552_s4 }
0x146c   :  { %379 = vrot.lane.b32.xlu0 %v1705_v48, %s1552_s4 }
0x1470   :  { %603 = vrot.lane.b32.xlu0 %v1743_v30, %s1552_s4  ;;  %v1066_v30 = vld [vmem:[%s1839_s6 + $0x18] sm:$0xff] }
0x1471   :  { %1352 = vmatpush3.msra.mxu1 %v1066_v30 }
0x1472   :  { %1353 = vmatprep.subr.mxu1 %v1549_v0 }
0x1473   :  { %1354 = vmatpush3.msra.mxu1 %v1065_v53 }
0x1474   :  { %827 = vrot.lane.b32.xlu0 %v825_v8, %s1552_s4  ;;  %1355 = vmatprep.subr.mxu1 %v1549_v0 }
0x14da   :  { %v1041_v46 = vpop.permute.xlu0 %1040 }
0x14db   :  { %v1043_v47 = vadd.f32 %v1041_v46, %v1033_v45 }
0x14dd   :  { %1434 = vtanh.f32 %v1043_v47 }
0x14de   :  { %v380_v49 = vpop.permute.xlu0 %379 }
0x14df   :  { %383 = vst.msk [vmem:[#allocation2] sm:$0x2] %vm382_vm5, %v380_v49 }
0x14e2   :  { %v604_v50 = vpop.permute.xlu0 %603 }
0x14e3   :  { %607 = vst.msk [vmem:[#allocation2] sm:$0x8] %vm606_vm6, %v604_v50 }
0x14e6   :  { %v828_v52 = vpop.permute.xlu0 %827 }
0x14e7   :  { %831 = vst.msk [vmem:[#allocation2] sm:$0x20] %vm830_vm7, %v828_v52 }
0x14ea   :  { %v1435_v48 = vpop.eup %1434 }
0x14eb   :  { %1046 = vrot.lane.b32.xlu1 %v1435_v48, %s1551_s1 }
0x14ef   :  { %491 = vrot.lane.b32.xlu1 %v1724_v9, %s1552_s4  ;;  %v1064_v9 = vld [vmem:[%s1839_s6 + $0x8] sm:$0xff] }
0x14f0   :  { %1356 = vmatpush3.msra.mxu1 %v1064_v9 }
0x14f1   :  { %1357 = vmatprep.subr.mxu1 %v1549_v0 }
0x14f3   :  { %715 = vrot.lane.b32.xlu1 %v1762_v51, %s1552_s4  ;;  %v1063_v51 = vld [vmem:[%s1839_s6] sm:$0xff]  ;;  %s1554_s6 = smov [#allocation9]  }
0x14f4   :  { %1358 = vmatpush3.msra.mxu1 %v1063_v51  ;;  %s1163_s27 = sshll.u32 %s1554_s6, 4  ;;  %s1164_s27 = int_to_ptr.vmem [resolvable:$true] %s1163_s27 }
0x14f5   :  { %s1498_s2 = scalar_lea.vmem %s1164_s27, 16  ;;  %s1502_s5 = scalar_lea.vmem %s1164_s27, 32 }
0x14f6   :  { %p1499_p1 = scmp.ne.s32.totalorder %s1164_s27, %s1498_s2  ;;  %p1503_p2 = scmp.lt.s32.totalorder %s1164_s27, %s1164_s27 }
0x14f7   :  { %939 = vrot.lane.b32.xlu1 %v937_v31, %s1552_s4  ;;  %p1504_p3 = scmp.lt.s32.totalorder %s1502_s5, %s1498_s2 }
0x14f9   :  { %p1505_p4 = por %p1504_p3, %p1503_p2 }
0x14fb   :  { %1058 = vrot.lane.b32.xlu1 %v1043_v47, %s1553_s18  ;;  %p1506_p5 = pnand %p1505_p4, %p1499_p1 }
0x155d   :  { %v1047_v54 = vpop.permute.xlu1 %1046 }
0x155e   :  { %v1049_v55 = vmul.f32 %v1433_v42, %v1047_v54 }
0x1560   :  { %1051 = vrot.lane.b32.xlu0 %v1049_v55, %s1552_s4 }
0x1561   :  { %v492_v56 = vpop.permute.xlu1 %491 }
0x1562   :  { %495 = vst.msk [vmem:[#allocation2] sm:$0x4] %vm494_vm8, %v492_v56 }
0x1565   :  { %v716_v1 = vpop.permute.xlu1 %715 }
0x1566   :  { %719 = vst.msk [vmem:[#allocation2] sm:$0x10] %vm718_vm9, %v716_v1 }
0x1569   :  { %v940_v57 = vpop.permute.xlu1 %939 }
0x156a   :  { %943 = vst.msk [vmem:[#allocation2] sm:$0x40] %vm942_vm10, %v940_v57 }
0x156d   :  { %v1059_v58 = vpop.permute.xlu1 %1058 }
0x156e   :  { %1061 = vst.msk [vmem:[#allocation10 - $0x7] sm:$0x80] %vm1054_vm11, %v1059_v58 }
0x15d2   :  { %v1052_v3 = vpop.permute.xlu0 %1051 }
0x15d3   :  { %1055 = vst.msk [vmem:[#allocation2] sm:$0x80] %vm1054_vm11, %v1052_v3  ;;  %1056 = vst.msk [vmem:[#allocation9 - $0x7] sm:$0x80] %vm1054_vm11, %v1052_v3 }
0x15da   :  { %v1062_v0 = vld [vmem:[#allocation2] sm:$0xff] }
0x15db   :  { %1360 = vmatmul.mubr.msk.f32.vlgmr.msra.gmra.mxu1 %vm162_vm3, %v1062_v0 }
0x15dc   :  { %1509 = shalt.err (!%p1506_p5)
}
0x15dd   :  { %1166 = dma.vmem_to_hbm [thread:$0]  %s1164_s27, 16, %s1842_s9, [#allocation5]  }
0x15de   :  { %s1518_s11 = scalar_lea.vmem %s1174_s28, 16  ;;  %s1522_s12 = scalar_lea.vmem %s1174_s28, 32 }
0x15df   :  { %p1519_p6 = scmp.ne.s32.totalorder %s1174_s28, %s1518_s11  ;;  %p1523_p7 = scmp.lt.s32.totalorder %s1174_s28, %s1174_s28 }
0x15e0   :  { %p1524_p8 = scmp.lt.s32.totalorder %s1522_s12, %s1518_s11 }
0x15e2   :  { %p1525_p9 = por %p1524_p8, %p1523_p7 }
0x15e4   :  { %p1526_p10 = pnand %p1525_p9, %p1519_p6 }
0x15e6   :  { %1529 = shalt.err (!%p1526_p10)
}
0x15e7   :  { %1176 = dma.vmem_to_hbm [thread:$0]  %s1174_s28, 16, %s1843_s10, [#allocation11]   ;;  %v1209_v59 = vld [vmem:[%s1840_s7] ss:$0 sm:$0xff]  ;;  %v1147_v6 = vlaneseq  ;;  %vm1153_vm13 = vcmask 31744  }
0x15e9   :  { %v1148_v62 = vand.u32 127, %v1147_v6 }
0x15eb   :  { %vm1149_vm12 = vcmp.lt.s32.totalorder %v1148_v62, 2 }
0x169b   :  { %v1143_v60 = vpop.f32.mrf.mxu1 }
0x169c   :  { %v1144_v5 = vadd.f32 %v1209_v59, %v1143_v60 }
0x169d   :  { %v1361_v61 = vpop.f32.mrf.mxu1 }
0x169e   :  { %1436 = vtanh.f32 %v1144_v5 }
0x16ab   :  { %v1437_v63 = vpop.eup %1436 }
0x16ac   :  { %v1151_v2 = vmul.f32 3.1415927, %v1437_v63 }
0x16ae   :  { %v1152_v4 = vsel %vm1149_vm12, %v1151_v2, %v1144_v5 }
0x16af   :  { %1154 = vst.msk [vmem:[%s1841_s8] sm:$0xff] %vm1153_vm13, %v1152_v4 }
0x16b0   :  { %1542 = dma.done.wait [#allocation5], 16  }
0x16b1   :  { %1543 = vsyncadd [#allocation5], 4294967280 }
0x16b2   :  { %1544 = dma.done.wait [#allocation11], 16  }
0x16b3   :  { %1545 = vsyncadd [#allocation11], 4294967280 }
0x16b4   :  { %1185 = vsyncpa [#allocation4], 1 }
0x16b5   :  { %1186 = vsyncpa [#allocation7], 1 }
0x16b6   :  { %1187 = vsyncpa [#allocation5], 1 }
0x16b7   :  { %1188 = vsyncpa [#allocation11], 1 }

</bundles_post_ra>
